<compile_context>
chip_gen: v5e
topology: v5e:2x2
jax: 0.10.0
libtpu: 0.0.40
codegen_flags: <defaults>
</compile_context>

<pallas_src>
import jax
import jax.numpy as jnp
from jax.experimental import pallas as pl
from jax.experimental.pallas import tpu as pltpu

LEAKY_SLOPE = 0.01   # nn.LeakyReLU default negative_slope
BN_EPS = 1e-5        # nn.BatchNorm1d default eps


# --------------------------------------------------------------------------
# Kernel
# --------------------------------------------------------------------------
def _make_ffn_kernel(num_hidden):
    """Fused kernel for `num_hidden` folded (Linear+BN+LeakyReLU) blocks plus
    the final Linear(., 1), in the batch-on-lanes layout."""

    def kernel(*refs):
        # refs = [x_t] + per-layer [w, b] + [out_w_col, out_b] + [out]
        x_ref = refs[0]
        h = x_ref[...]                                   # (in_dim, TM)
        if h.dtype != jnp.float32:
            h = h.astype(jnp.float32)

        idx = 1
        for _ in range(num_hidden):
            w_ref, b_ref = refs[idx], refs[idx + 1]
            idx += 2
            w = w_ref[...].astype(jnp.float32)           # (out, in) (bf16 -> f32)
            # Folded Linear + BatchNorm (eval mode)
            h = jnp.dot(w, h, preferred_element_type=jnp.float32) + b_ref[...]
            # LeakyReLU
            h = jnp.where(h >= 0, h, LEAKY_SLOPE * h)
            # Dropout(0.2): identity in eval mode.

        w_out = refs[idx][...].astype(jnp.float32)       # (last_hidden, 1)
        b_out = refs[idx + 1][...]                       # (1, 1)
        out_ref = refs[idx + 2]                          # (1, TM) lane-dense
        # Width-1 output layer: VPU multiply + sublane reduce (MXU not needed).
        out_ref[...] = jnp.sum(h * w_out, axis=0, keepdims=True) + b_out

    return kernel


# --------------------------------------------------------------------------
# Wrapper
# --------------------------------------------------------------------------
def _choose_batch_tile(n, input_dim, hidden_sizes,
                       vmem_budget_bytes=16 << 20):
    """Largest lane-aligned batch tile that keeps double-buffered activation
    tiles within a conservative VMEM budget (safe for v7x's 32 MiB default
    scoped limit; v5e/v6e have more headroom)."""
    widest = max([input_dim, 1] + list(hidden_sizes))
    # 2x double-buffered x tile + 2x double-buffered out tile
    # + ~2 live f32 activation tiles inside the body.
    bytes_per_col = 4 * (2 * input_dim + 2 * 1 + 2 * widest)
    tm = vmem_budget_bytes // max(bytes_per_col, 1)
    tm = min(tm, 1024, n)
    if tm < n:
        tm = max(128, (tm // 128) * 128)   # keep the lane axis 128-aligned
    return int(tm)


def feedforward_nn_improved(x, folded_hidden, out_w_col, out_b,
                            *, batch_tile=None):
    """x: [batch, input_dim] f32.  folded_hidden: list of (W' [out,in],
    b' [out,1]).  out_w_col: [last_hidden, 1].  out_b: [1,1].
    Returns [batch, 1] f32."""
    n, input_dim = x.shape
    hidden_sizes = [w.shape[0] for (w, _) in folded_hidden]
    tm = batch_tile or _choose_batch_tile(n, input_dim, hidden_sizes)

    # Batch on the lane axis (layout plumbing only).
    x_t = x.T                                            # (input_dim, n)

    flat_inputs = [x_t]
    in_specs = [pl.BlockSpec((input_dim, tm), lambda i: (0, i))]
    for (w, b) in folded_hidden:
        flat_inputs += [w, b]
        in_specs += [pl.BlockSpec(w.shape, lambda i: (0, 0)),   # resident
                     pl.BlockSpec(b.shape, lambda i: (0, 0))]   # resident
    flat_inputs += [out_w_col, out_b]
    in_specs += [pl.BlockSpec(out_w_col.shape, lambda i: (0, 0)),
                 pl.BlockSpec(out_b.shape, lambda i: (0, 0))]

    out_t = pl.pallas_call(
        _make_ffn_kernel(len(folded_hidden)),
        out_shape=jax.ShapeDtypeStruct((1, n), jnp.float32),
        grid=(pl.cdiv(n, tm),),
        in_specs=in_specs,
        out_specs=pl.BlockSpec((1, tm), lambda i: (0, i)),      # lane-dense
        compiler_params=pltpu.CompilerParams(
            dimension_semantics=("parallel",)),
    )(*flat_inputs)

    return out_t.T                                        # (n, 1)


# --------------------------------------------------------------------------
# Parameter construction (PyTorch-style) + host-side BN folding
# --------------------------------------------------------------------------
def init_params(key, input_dim, hidden_layer_sizes):
    """Synthetic PyTorch-style parameters: per hidden layer
    (W [out,in], b [out], gamma, beta, running_mean, running_var), plus the
    final Linear (out_w [1,in], out_b [1])."""
    raw_hidden = []
    in_dim = input_dim
    for size in hidden_layer_sizes:
        key, kw, kb, kg, kbe, km, kv = jax.random.split(key, 7)
        bound = 1.0 / jnp.sqrt(in_dim)
        w = jax.random.uniform(kw, (size, in_dim), jnp.float32, -bound, bound)
        b = jax.random.uniform(kb, (size,), jnp.float32, -bound, bound)
        gamma = 1.0 + 0.1 * jax.random.normal(kg, (size,), jnp.float32)
        beta = 0.1 * jax.random.normal(kbe, (size,), jnp.float32)
        mean = 0.1 * jax.random.normal(km, (size,), jnp.float32)
        var = 1.0 + 0.1 * jax.random.uniform(kv, (size,), jnp.float32)
        raw_hidden.append((w, b, gamma, beta, mean, var))
        in_dim = size
    key, kw, kb = jax.random.split(key, 3)
    bound = 1.0 / jnp.sqrt(in_dim)
    out_w = jax.random.uniform(kw, (1, in_dim), jnp.float32, -bound, bound)
    out_b = jax.random.uniform(kb, (1,), jnp.float32, -bound, bound)
    return raw_hidden, out_w, out_b


def fold_params(raw_hidden, out_w, out_b, weight_dtype=jnp.bfloat16):
    """Fold eval-mode BatchNorm into the preceding Linear (f32 on host) and
    cast weights to `weight_dtype` (use f32 on v5e, bf16 on v6e/v7x)."""
    folded = []
    for (w, b, gamma, beta, mean, var) in raw_hidden:
        scale = gamma / jnp.sqrt(var + BN_EPS)                       # (out,)
        w_f = (w * scale[:, None]).astype(weight_dtype)              # (out,in)
        b_f = (b * scale + beta - mean * scale)[:, None]             # (out,1)
        folded.append((w_f, b_f.astype(jnp.float32)))
    out_w_col = out_w.T.astype(weight_dtype)                         # (in,1)
    out_b_col = out_b.reshape(1, 1).astype(jnp.float32)              # (1,1)
    return folded, out_w_col, out_b_col


# --------------------------------------------------------------------------
# References
# --------------------------------------------------------------------------
def reference_eval_mode(x, raw_hidden, out_w, out_b):
    """Unfolded f32 eval-mode forward (matches the PyTorch module in eval())."""
    h = x
    for (w, b, gamma, beta, mean, var) in raw_hidden:
        h = h @ w.T + b
        h = (h - mean) / jnp.sqrt(var + BN_EPS) * gamma + beta
        h = jnp.where(h >= 0, h, LEAKY_SLOPE * h)
    return h @ out_w.T + out_b


def reference_from_folded(x, folded_hidden, out_w_col, out_b):
    """Same math as the kernel (folded params, weights up-cast to f32)."""
    h = x
    for (w, b) in folded_hidden:
        h = h @ w.astype(jnp.float32).T + b[:, 0]
        h = jnp.where(h >= 0, h, LEAKY_SLOPE * h)
    return h @ out_w_col.astype(jnp.float32) + out_b[0]


# --------------------------------------------------------------------------
if __name__ == "__main__":
    batch = 512
    input_dim = 16
    hidden_layer_sizes = (32, 32)

    key = jax.random.PRNGKey(0)
    key, kx = jax.random.split(key)
    x = jax.random.normal(kx, (batch, input_dim), jnp.float32)
    raw_hidden, out_w, out_b = init_params(key, input_dim, hidden_layer_sizes)

    # --- f32 weights (v5e-friendly path); explicit tile to exercise the grid.
    fh32, ow32, ob32 = fold_params(raw_hidden, out_w, out_b, jnp.float32)
    y32 = jax.block_until_ready(
        feedforward_nn_improved(x, fh32, ow32, ob32, batch_tile=256))
    ref_eval = reference_eval_mode(x, raw_hidden, out_w, out_b)
    assert y32.shape == (batch, 1)
    assert jnp.allclose(y32, ref_eval, atol=1e-4, rtol=1e-4)

    # --- bf16 weights (v6e/v7x path: halves weight HBM/VMEM traffic).
    fh16, ow16, ob16 = fold_params(raw_hidden, out_w, out_b, jnp.bfloat16)
    y16 = jax.block_until_ready(feedforward_nn_improved(x, fh16, ow16, ob16))
    ref16 = reference_from_folded(x, fh16, ow16, ob16)
    assert y16.shape == (batch, 1)
    assert jnp.allclose(y16, ref16, atol=1e-4, rtol=1e-4)

    print("KERNEL_OK")
</pallas_src>

<mosaic_0001>
module attributes {stable_mosaic.version = 11 : i64} {
  func.func @kernel(%arg0: i32, %arg1: memref<16x256xf32, #tpu.memory_space<vmem>>, %arg2: memref<32x16xf32, #tpu.memory_space<vmem>>, %arg3: memref<32x1xf32, #tpu.memory_space<vmem>>, %arg4: memref<32x32xf32, #tpu.memory_space<vmem>>, %arg5: memref<32x1xf32, #tpu.memory_space<vmem>>, %arg6: memref<32x1xf32, #tpu.memory_space<vmem>>, %arg7: memref<1x1xf32, #tpu.memory_space<vmem>>, %arg8: memref<1x256xf32, #tpu.memory_space<vmem>>) attributes {dimension_semantics = [#tpu.dimension_semantics<parallel>], iteration_bounds = array<i64: 2>, scalar_prefetch = 0 : i64, scratch_operands = 0 : i64, tpu.core_type = #tpu.core_type<tc>, window_params = [{transform_indices = @transform_0, window_bounds = array<i64: 16, 256>}, {pipeline_mode = #tpu.pipeline_mode<synchronous>, transform_indices = @transform_1, window_bounds = array<i64: 32, 16>}, {pipeline_mode = #tpu.pipeline_mode<synchronous>, transform_indices = @transform_2, window_bounds = array<i64: 32, 1>}, {pipeline_mode = #tpu.pipeline_mode<synchronous>, transform_indices = @transform_3, window_bounds = array<i64: 32, 32>}, {pipeline_mode = #tpu.pipeline_mode<synchronous>, transform_indices = @transform_4, window_bounds = array<i64: 32, 1>}, {pipeline_mode = #tpu.pipeline_mode<synchronous>, transform_indices = @transform_5, window_bounds = array<i64: 32, 1>}, {pipeline_mode = #tpu.pipeline_mode<synchronous>, transform_indices = @transform_6, window_bounds = array<i64: 1, 1>}, {transform_indices = @transform_7, window_bounds = array<i64: 1, 256>}]} {
    %c0 = arith.constant 0 : index
    %c0_0 = arith.constant 0 : index
    %0 = vector.load %arg1[%c0, %c0_0] : memref<16x256xf32, #tpu.memory_space<vmem>>, vector<16x256xf32>
    %c0_1 = arith.constant 0 : index
    %c0_2 = arith.constant 0 : index
    %1 = vector.load %arg2[%c0_1, %c0_2] : memref<32x16xf32, #tpu.memory_space<vmem>>, vector<32x16xf32>
    %cst = arith.constant dense<0.000000e+00> : vector<32x256xf32>
    %2 = tpu.matmul %1, %0, %cst {dimension_numbers = #tpu.dot_dimension_numbers<[1], [0], [0], [1], [0, 0, 1, 1], [], []>} : vector<32x16xf32>, vector<16x256xf32>, vector<32x256xf32> -> vector<32x256xf32>
    %c0_3 = arith.constant 0 : index
    %c0_4 = arith.constant 0 : index
    %3 = vector.load %arg3[%c0_3, %c0_4] : memref<32x1xf32, #tpu.memory_space<vmem>>, vector<32x1xf32>
    %4 = vector.broadcast %3 : vector<32x1xf32> to vector<32x256xf32>
    %5 = arith.addf %2, %4 : vector<32x256xf32>
    %cst_5 = arith.constant 0.000000e+00 : f32
    %6 = vector.broadcast %cst_5 : f32 to vector<32x256xf32>
    %7 = arith.cmpf oge, %5, %6 : vector<32x256xf32>
    %cst_6 = arith.constant 0.00999999977 : f32
    %8 = vector.broadcast %cst_6 : f32 to vector<32x256xf32>
    %9 = arith.mulf %8, %5 : vector<32x256xf32>
    %10 = arith.select %7, %5, %9 : vector<32x256xi1>, vector<32x256xf32>
    %c0_7 = arith.constant 0 : index
    %c0_8 = arith.constant 0 : index
    %11 = vector.load %arg4[%c0_7, %c0_8] : memref<32x32xf32, #tpu.memory_space<vmem>>, vector<32x32xf32>
    %cst_9 = arith.constant dense<0.000000e+00> : vector<32x256xf32>
    %12 = tpu.matmul %11, %10, %cst_9 {dimension_numbers = #tpu.dot_dimension_numbers<[1], [0], [0], [1], [0, 0, 1, 1], [], []>} : vector<32x32xf32>, vector<32x256xf32>, vector<32x256xf32> -> vector<32x256xf32>
    %c0_10 = arith.constant 0 : index
    %c0_11 = arith.constant 0 : index
    %13 = vector.load %arg5[%c0_10, %c0_11] : memref<32x1xf32, #tpu.memory_space<vmem>>, vector<32x1xf32>
    %14 = vector.broadcast %13 : vector<32x1xf32> to vector<32x256xf32>
    %15 = arith.addf %12, %14 : vector<32x256xf32>
    %cst_12 = arith.constant 0.000000e+00 : f32
    %16 = vector.broadcast %cst_12 : f32 to vector<32x256xf32>
    %17 = arith.cmpf oge, %15, %16 : vector<32x256xf32>
    %cst_13 = arith.constant 0.00999999977 : f32
    %18 = vector.broadcast %cst_13 : f32 to vector<32x256xf32>
    %19 = arith.mulf %18, %15 : vector<32x256xf32>
    %20 = arith.select %17, %15, %19 : vector<32x256xi1>, vector<32x256xf32>
    %c0_14 = arith.constant 0 : index
    %c0_15 = arith.constant 0 : index
    %21 = vector.load %arg6[%c0_14, %c0_15] : memref<32x1xf32, #tpu.memory_space<vmem>>, vector<32x1xf32>
    %c0_16 = arith.constant 0 : index
    %c0_17 = arith.constant 0 : index
    %22 = vector.load %arg7[%c0_16, %c0_17] : memref<1x1xf32, #tpu.memory_space<vmem>>, vector<1x1xf32>
    %23 = vector.broadcast %21 : vector<32x1xf32> to vector<32x256xf32>
    %24 = arith.mulf %20, %23 : vector<32x256xf32>
    %cst_18 = arith.constant dense<0.000000e+00> : vector<256xf32>
    %25 = vector.multi_reduction <add>, %24, %cst_18 [0] : vector<32x256xf32> to vector<256xf32>
    %26 = vector.shape_cast %25 : vector<256xf32> to vector<1x256xf32>
    %27 = vector.broadcast %22 : vector<1x1xf32> to vector<1x256xf32>
    %28 = arith.addf %26, %27 : vector<1x256xf32>
    %c0_19 = arith.constant 0 : index
    %c0_20 = arith.constant 0 : index
    %29 = vector.load %arg8[%c0_19, %c0_20] : memref<1x256xf32, #tpu.memory_space<vmem>>, vector<1x256xf32>
    tpu.vector_store %arg8[%c0_19, %c0_20], %28 {strides = array<i32>} : memref<1x256xf32, #tpu.memory_space<vmem>>, vector<1x256xf32>,
    return
  }
  func.func @transform_0(%arg0: i32) -> (i32, i32) {
    %c0_i32 = arith.constant 0 : i32
    %c0_i32_0 = arith.constant 0 : i32
    return %c0_i32, %arg0 : i32, i32
  }
  func.func @transform_1(%arg0: i32) -> (i32, i32) {
    %c0_i32 = arith.constant 0 : i32
    %c0_i32_0 = arith.constant 0 : i32
    %c0_i32_1 = arith.constant 0 : i32
    return %c0_i32, %c0_i32_0 : i32, i32
  }
  func.func @transform_2(%arg0: i32) -> (i32, i32) {
    %c0_i32 = arith.constant 0 : i32
    %c0_i32_0 = arith.constant 0 : i32
    %c0_i32_1 = arith.constant 0 : i32
    return %c0_i32, %c0_i32_0 : i32, i32
  }
  func.func @transform_3(%arg0: i32) -> (i32, i32) {
    %c0_i32 = arith.constant 0 : i32
    %c0_i32_0 = arith.constant 0 : i32
    %c0_i32_1 = arith.constant 0 : i32
    return %c0_i32, %c0_i32_0 : i32, i32
  }
  func.func @transform_4(%arg0: i32) -> (i32, i32) {
    %c0_i32 = arith.constant 0 : i32
    %c0_i32_0 = arith.constant 0 : i32
    %c0_i32_1 = arith.constant 0 : i32
    return %c0_i32, %c0_i32_0 : i32, i32
  }
  func.func @transform_5(%arg0: i32) -> (i32, i32) {
    %c0_i32 = arith.constant 0 : i32
    %c0_i32_0 = arith.constant 0 : i32
    %c0_i32_1 = arith.constant 0 : i32
    return %c0_i32, %c0_i32_0 : i32, i32
  }
  func.func @transform_6(%arg0: i32) -> (i32, i32) {
    %c0_i32 = arith.constant 0 : i32
    %c0_i32_0 = arith.constant 0 : i32
    %c0_i32_1 = arith.constant 0 : i32
    return %c0_i32, %c0_i32_0 : i32, i32
  }
  func.func @transform_7(%arg0: i32) -> (i32, i32) {
    %c0_i32 = arith.constant 0 : i32
    %c0_i32_0 = arith.constant 0 : i32
    return %c0_i32, %arg0 : i32, i32
  }
}

</mosaic_0001>

<bundles_post_ra>
// kernel: tpu_custom_call.1
= control target key start
LH: loop header
LB: loop body
LE: loop exit
PB: predicated region body
PF: predicated region fallthrough
CT: control target
= control target key end

     0   :  { %s1060_s0 = inlined_call_operand.vmem [shape: f32[16,512], index: 0, kind: input, shape index: {}]   ;;  %s1061_s1 = inlined_call_operand.vmem [shape: f32[32,16], index: 1, kind: input, shape index: {}]   ;;  %s1062_s2 = inlined_call_operand.vmem [shape: f32[32,1], index: 2, kind: input, shape index: {}]   ;;  %s1063_s3 = inlined_call_operand.vmem [shape: f32[32,32], index: 3, kind: input, shape index: {}]   ;;  %s1064_s4 = inlined_call_operand.vmem [shape: f32[32,1], index: 4, kind: input, shape index: {}]   ;;  %s1065_s5 = inlined_call_operand.vmem [shape: f32[32,1], index: 5, kind: input, shape index: {}]   ;;  %s1066_s6 = inlined_call_operand.<no memory space> [shape: f32[1,1], index: 6, kind: input, shape index: {}]   ;;  %s1067_s7 = inlined_call_operand.hbm [shape: f32[1,512], index: 7, kind: output, shape index: {}]  }
   0x1   :  { %v12_v0 = vstv %s1066_s6 }
   0x2   :  { %13 = vst [vmem:[#allocation2] sm:$0x1] %v12_v0 }
   0x3   :  { %14 = vsyncpa [#allocation5], 0 }
   0x4   :  { %16 = vsyncpa [#allocation5 + $0x1], 0  ;;  %s889_s26 = smov 0   ;;  %s891_s27 = smov 0  }
   0x5   :  { %s893_s28 = smov 0   ;;  %s895_s29 = smov 0  }
   0x6 LB: > { %s707_s6 = sadd.s32 4294967295, %s843_s29   ;;  %s708_s30 = sadd.s32 4294967294, %s843_s29   ;;  %s843_s29 = sphi %s895_s29, %s1073_s29   ;;  %s839_s28 = sphi %s893_s28, %s1072_s28   ;;  %s835_s27 = sphi %s891_s27, %s1071_s27   ;;  %s831_s26 = sphi %s889_s26, %s1070_s26  }
   0x7   : > { %s912_s8 = sadd.s32 1, %s843_s29   ;;  %s29_s9 = sadd.s32 1, %s839_s28 }
   0x8   : > { %s26_s10 = ssub.s32 %s843_s29, %s912_s8  ;;  %p36_p0 = scmp.ne.s32.totalorder %s839_s28, %s835_s27 }
   0x9   : > { %p27_p1 = scmp.eq.s32.totalorder %s26_s10, 0  ;;  %p37_p2 = scmp.eq.s32.totalorder %s843_s29, 0 }
   0xa   : > { %p192_p3 = scmp.eq.s32.totalorder %s707_s6, 1  ;;  %p197_p4 = scmp.ne.s32.totalorder %s835_s27, %s831_s26 }
   0xb   : > { %s925_s11 = scalar_select %p27_p1, %s839_s28, %s29_s9  }
   0xc   : > { %p38_p5 = por %p37_p2, %p36_p0  ;;  %p927_p6 = por %p192_p3, %p36_p0 }
   0xd   : > { %p198_p7 = scmp.eq.s32.totalorder %s708_s30, 1  ;;  %p710_p9 = scmp.ge.s32.totalorder %s843_s29, 2 }
   0xf   : > { %p931_p8 = por %p198_p7, %p197_p4  ;;  %232 = sbr.rel (%p710_p9) target bundleno = 28 (0x1c), region = 40 }
  0x14   : > { %235 = sbr.rel (!%p38_p5) target bundleno = 28 (0x1c), region = 44  ;;  %s237_s14 = sand.u32 (%p38_p5), 1, %s839_s28  }
  0x15   : > { %s737_s15 = sshll.u32 (%p38_p5), %s843_s29, 4  ;;  %s711_s16 = sshll.u32 (%p38_p5), %s237_s14, 5 }
  0x16   : > { %s242_s19 = scalar_lea.vmem (%p38_p5), %s1060_s0, %s737_s15  ;;  %s239_s20 = scalar_lea.vmem (%p38_p5), [#allocation3], %s711_s16 }
  0x17   : > { %v255_v1 = vld [vmem:[%s242_s19] sm:$0xff] (%p38_p5)  ;;  %v257_v2 = vld [vmem:[%s242_s19 + $0x8] sm:$0xff] (%p38_p5) }
  0x18   : > { %v259_v3 = vld [vmem:[%s242_s19 + $0x20] sm:$0xff] (%p38_p5)  ;;  %256 = vst [vmem:[%s239_s20] sm:$0xff] (%p38_p5), %v255_v1  ;;  %v261_v4 = vld [vmem:[%s242_s19 + $0x28] sm:$0xff] (%p38_p5) }
  0x19   : > { %258 = vst [vmem:[%s239_s20 + $0x8] sm:$0xff] %v257_v2 }
  0x1a   : > { %260 = vst [vmem:[%s239_s20 + $0x10] sm:$0xff] %v259_v3 }
  0x1b   : > { %262 = vst [vmem:[%s239_s20 + $0x18] sm:$0xff] %v261_v4 }
  0x1c PF: > { %p714_p10 = scmp.ge.s32.totalorder %s843_s29, 1  ;;  %p267_p11 = scmp.lt.s32.totalorder %s843_s29, 3 }
  0x1e   : > { %p268_p12 = pnand %p714_p10, %p267_p11 }
  0x1f   : > { %s949_s23 = sand.u32 (!%p268_p12), 1, %s835_s27   ;;  %s734_s22 = sshll.u32 (!%p268_p12), %s707_s6, 1 }
  0x20   : > { %271 = sbr.rel (%p268_p12) target bundleno = 391 (0x187), region = 67  ;;  %s715_s30 = sshll.u32 (!%p268_p12), %s949_s23, 5 }
  0x21   : > { %s276_s9 = scalar_lea.vmem (!%p268_p12), [#allocation3], %s715_s30  ;;  %s716_s21 = sshll.u32 (!%p268_p12), %s949_s23, 1 }
  0x22   : > { %s638_s30 = scalar_lea.hbm (!%p268_p12), %s1067_s7, %s734_s22  ;;  %s628_s6 = scalar_lea.sflag (!%p268_p12), [#allocation5], %s949_s23 }
  0x23   : > { %s642_s14 = sshll.u32 (!%p268_p12), %s638_s30, 4  ;;  %s801_s19 = scalar_lea.hbm (!%p268_p12), %s1067_s7, 4  ;;  %s643_s14 = int_to_ptr.hbm [resolvable:$true] %s642_s14 }
  0x24   : > { %s795_s15 = sshra.s32 (!%p268_p12), %s643_s14, 4  ;;  %s796_s15 = int_to_ptr.hbm [resolvable:$true] %s795_s15 }
  0x25   : > { %v318_v5 = vld [vmem:[%s1062_s2 + $0x18] sm:$0xff]  ;;  %v316_v6 = vld [vmem:[%s1062_s2 + $0x8] sm:$0xff]  ;;  %v845_v7 = vmov 0   ;;  %v311_v12 = vld [vmem:[%s1061_s1] sm:$0xff]  ;;  %vm339_vm0 = vcmask 130048   ;;  %vm462_vm9 = vcmask 261120   ;;  %p802_p2 = scmp.lt.s32.totalorder %s796_s15, %s1067_s7 }
  0x26   : > { %778 = vset.pattern.permute.xlu0 %v845_v7  ;;  %779 = vset.pattern.permute.xlu1 %v845_v7  ;;  %v309_v8 = vld [vmem:[%s276_s9 + $0x10] sm:$0xff]  ;;  %v310_v9 = vld [vmem:[%s276_s9 + $0x18] sm:$0xff]  ;;  %v307_v10 = vld [vmem:[%s276_s9] sm:$0xff]  ;;  %s797_s16 = scalar_lea.hbm %s796_s15, 2 }
  0x27   : > { %336 = vperm.xlu0 %778, %v318_v5   ;;  %326 = vperm.xlu1 %779, %v316_v6   ;;  %v308_v11 = vld [vmem:[%s276_s9 + $0x8] sm:$0xff]  ;;  %v315_v14 = vld [vmem:[%s1062_s2] sm:$0xff]  ;;  %v441_v17 = vld [vmem:[%s1064_s4 + $0x18] sm:$0xff]  ;;  %s304_s9 = scalar_lea.vmem [#allocation4], %s716_s21  ;;  %p798_p13 = scmp.ne.s32.totalorder %s796_s15, %s797_s16 }
  0x28   : > { %780 = vset.pattern.permute.xlu2 %v845_v7  ;;  %366 = vmatpush.msra.mxu0 %v309_v8  ;;  %v317_v13 = vld [vmem:[%s1062_s2 + $0x10] sm:$0xff]  ;;  %v312_v15 = vld [vmem:[%s1061_s1 + $0x8] sm:$0xff]  ;;  %v314_v21 = vld [vmem:[%s1061_s1 + $0x18] sm:$0xff]  ;;  %s640_s10 = sshll.u32 %s304_s9, 4  ;;  %p803_p3 = scmp.lt.s32.totalorder %s801_s19, %s797_s16  ;;  %s641_s10 = int_to_ptr.vmem [resolvable:$true] %s640_s10 }
  0x29   : > { %395 = vmatpush.msra.mxu1 %v310_v9  ;;  %v440_v16 = vld [vmem:[%s1064_s4 + $0x10] sm:$0xff]  ;;  %v558_v19 = vld [vmem:[%s1065_s5 + $0x8] sm:$0xff]  ;;  %v561_v22 = vld [vmem:[#allocation2] sm:$0x1]  ;;  %p799_p0 = pnand %p798_p13, %p927_p6 }
  0x2a   : > { %367 = vmatpush.msra.mxu0 %v307_v10  ;;  %v313_v18 = vld [vmem:[%s1061_s1 + $0x10] sm:$0xff]  ;;  %v438_v32 = vld [vmem:[%s1064_s4] sm:$0xff]  ;;  %v439_v52 = vld [vmem:[%s1064_s4 + $0x8] sm:$0xff]  ;;  %p804_p4 = por %p803_p3, %p802_p2 }
  0x2b   : > { %396 = vmatpush.msra.mxu1 %v308_v11  ;;  %717 = vmatmul.msk.f32.vlgmr.msra.gmra.mxu0 %vm339_vm0, %v311_v12  ;;  %v559_v20 = vld [vmem:[%s1065_s5 + $0x10] sm:$0xff]  ;;  %v434_v59 = vld [vmem:[%s1063_s3] sm:$0xff]  ;;  %v435_v63 = vld [vmem:[%s1063_s3 + $0x8] sm:$0xff]  ;;  %p800_p1 = pneg %p799_p0 }
  0x2c   : > { %721 = vmatmul.msk.f32.vlgmr.msra.gmra.mxu1 %vm339_vm0, %v311_v12  ;;  %444 = vperm.xlu2 %780, %v438_v32   ;;  %v557_v62 = vld [vmem:[%s1065_s5] sm:$0xff]  ;;  %v560_v0 = vld [vmem:[%s1065_s5 + $0x18] sm:$0xff]  ;;  %v436_v1 = vld [vmem:[%s1063_s3 + $0x10] sm:$0xff] }
  0x2d   : > { %v437_v2 = vld [vmem:[%s1063_s3 + $0x18] sm:$0xff]  ;;  %p805_p5 = pnand %p804_p4, %p800_p1 }
  0x2f   : > { %331 = vperm.xlu0 %778, %v317_v13   ;;  %321 = vperm.xlu1 %779, %v315_v14  }
  0x33   : > { %718 = vmatmul.msk.f32.gmra.mxu0 %vm339_vm0, %v312_v15 }
  0x34   : > { %722 = vmatmul.msk.f32.gmra.mxu1 %vm339_vm0, %v312_v15  ;;  %449 = vperm.xlu2 %780, %v439_v52  }
  0x37   : > { %454 = vperm.xlu0 %778, %v440_v16   ;;  %459 = vperm.xlu1 %779, %v441_v17  }
  0x3b   : > { %719 = vmatmul.msk.f32.gmra.mxu0 %vm339_vm0, %v313_v18 }
  0x3c   : > { %723 = vmatmul.msk.f32.gmra.mxu1 %vm339_vm0, %v313_v18  ;;  %564 = vperm.xlu2 %780, %v557_v62  }
  0x3f   : > { %569 = vperm.xlu0 %778, %v558_v19   ;;  %574 = vperm.xlu1 %779, %v559_v20  }
  0x43   : > { %720 = vmatmul.msk.f32.gmra.mxu0 %vm339_vm0, %v314_v21 }
  0x44   : > { %724 = vmatmul.msk.f32.gmra.mxu1 %vm339_vm0, %v314_v21  ;;  %579 = vperm.xlu2 %780, %v560_v0  }
  0x47   : > { %610 = vperm.xlu0 %778, %v561_v22  }
  0x86   : > { %v445_v3 = vpop.permute.xlu2 %444 }
  0x8e   : > { %v450_v8 = vpop.permute.xlu2 %449 }
  0x96   : > { %v565_v22 = vpop.permute.xlu2 %564 }
  0x99   : > { %v337_v27 = vpop.permute.xlu0 %336  ;;  %v327_v28 = vpop.permute.xlu1 %326 }
  0xa1   : > { %v332_v31 = vpop.permute.xlu0 %331  ;;  %v322_v35 = vpop.permute.xlu1 %321 }
  0xa8   : > { %v369_v23 = vpop.f32.mrf.mxu0 }
  0xa9   : > { %v398_v24 = vpop.f32.mrf.mxu1  ;;  %v370_v42 = vadd.f32 %v369_v23, %v322_v35  ;;  %v455_v9 = vpop.permute.xlu0 %454 }
  0xaa   : > { %v399_v43 = vadd.f32 %v398_v24, %v322_v35  ;;  %v460_v13 = vpop.permute.xlu1 %459 }
  0xab   : > { %v418_v55 = vmul.f32 0.01, %v370_v42  ;;  %vm410_vm7 = vcmp.ge.f32.partialorder %v370_v42, 0.0 }
  0xac   : > { %v419_v56 = vmul.f32 0.01, %v399_v43  ;;  %vm411_vm8 = vcmp.ge.f32.partialorder %v399_v43, 0.0 }
  0xad   : > { %v426_v60 = vsel %vm410_vm7, %v370_v42, %v418_v55 }
  0xae   : > { %v427_v61 = vsel %vm411_vm8, %v399_v43, %v419_v56 }
  0xb0   : > { %v372_v25 = vpop.f32.mrf.mxu0 }
  0xb1   : > { %v401_v26 = vpop.f32.mrf.mxu1  ;;  %v373_v38 = vadd.f32 %v372_v25, %v327_v28 }
  0xb2   : > { %v402_v39 = vadd.f32 %v401_v26, %v327_v28  ;;  %v570_v28 = vpop.permute.xlu0 %569 }
  0xb3   : > { %v420_v50 = vmul.f32 0.01, %v373_v38  ;;  %vm412_vm5 = vcmp.ge.f32.partialorder %v373_v38, 0.0 }
  0xb4   : > { %v421_v51 = vmul.f32 0.01, %v402_v39  ;;  %vm413_vm6 = vcmp.ge.f32.partialorder %v402_v39, 0.0 }
  0xb5   : > { %v428_v57 = vsel %vm412_vm5, %v373_v38, %v420_v50 }
  0xb6   : > { %v429_v58 = vsel %vm413_vm6, %v402_v39, %v421_v51 }
  0xb8   : > { %v375_v29 = vpop.f32.mrf.mxu0 }
  0xb9   : > { %v404_v30 = vpop.f32.mrf.mxu1  ;;  %v376_v33 = vadd.f32 %v375_v29, %v332_v31 }
  0xba   : > { %v405_v34 = vadd.f32 %v404_v30, %v332_v31 }
  0xbb   : > { %v422_v44 = vmul.f32 0.01, %v376_v33  ;;  %vm414_vm3 = vcmp.ge.f32.partialorder %v376_v33, 0.0 }
  0xbc   : > { %v423_v45 = vmul.f32 0.01, %v405_v34  ;;  %vm415_vm4 = vcmp.ge.f32.partialorder %v405_v34, 0.0 }
  0xbd   : > { %v430_v53 = vsel %vm414_vm3, %v376_v33, %v422_v44 }
  0xbe   : > { %v431_v54 = vsel %vm415_vm4, %v405_v34, %v423_v45 }
  0xc0   : > { %v378_v36 = vpop.f32.mrf.mxu0 }
  0xc1   : > { %v407_v37 = vpop.f32.mrf.mxu1  ;;  %v379_v40 = vadd.f32 %v378_v36, %v337_v27 }
  0xc2   : > { %v408_v41 = vadd.f32 %v407_v37, %v337_v27  ;;  %v575_v37 = vpop.permute.xlu1 %574 }
  0xc3   : > { %vm416_vm1 = vcmp.ge.f32.partialorder %v379_v40, 0.0  ;;  %v424_v46 = vmul.f32 0.01, %v379_v40 }
  0xc4   : > { %vm417_vm2 = vcmp.ge.f32.partialorder %v408_v41, 0.0  ;;  %v425_v47 = vmul.f32 0.01, %v408_v41 }
  0xc5   : > { %v432_v48 = vsel %vm416_vm1, %v379_v40, %v424_v46 }
  0xc6   : > { %v433_v49 = vsel %vm417_vm2, %v408_v41, %v425_v47  ;;  %487 = vmatpush.msra.mxu2 %v432_v48  ;;  %v580_v48 = vpop.permute.xlu2 %579  ;;  %vm619_vm2 = vcmask 1040384  }
  0xc7   : > { %516 = vmatpush.msra.mxu3 %v433_v49 }
  0xc8   : > { %488 = vmatpush.msra.mxu2 %v430_v53 }
  0xc9   : > { %517 = vmatpush.msra.mxu3 %v431_v54 }
  0xca   : > { %489 = vmatpush.msra.mxu2 %v428_v57 }
  0xcb   : > { %518 = vmatpush.msra.mxu3 %v429_v58 }
  0xcc   : > { %490 = vmatpush.msra.mxu2 %v426_v60 }
  0xcd   : > { %519 = vmatpush.msra.mxu3 %v427_v61  ;;  %725 = vmatmul.msk.f32.vlgmr.msra.gmra.mxu2 %vm462_vm9, %v434_v59 }
  0xce   : > { %729 = vmatmul.msk.f32.vlgmr.msra.gmra.mxu3 %vm462_vm9, %v434_v59 }
  0xd5   : > { %726 = vmatmul.msk.f32.gmra.mxu2 %vm462_vm9, %v435_v63 }
  0xd6   : > { %730 = vmatmul.msk.f32.gmra.mxu3 %vm462_vm9, %v435_v63 }
  0xdd   : > { %727 = vmatmul.msk.f32.gmra.mxu2 %vm462_vm9, %v436_v1 }
  0xde   : > { %731 = vmatmul.msk.f32.gmra.mxu3 %vm462_vm9, %v436_v1  ;;  %v611_v1 = vpop.permute.xlu0 %610 }
  0xe5   : > { %728 = vmatmul.msk.f32.gmra.mxu2 %vm462_vm9, %v437_v2 }
  0xe6   : > { %732 = vmatmul.msk.f32.gmra.mxu3 %vm462_vm9, %v437_v2 }
 0x150   : > { %v492_v4 = vpop.f32.mrf.mxu2 }
 0x151   : > { %v521_v5 = vpop.f32.mrf.mxu3  ;;  %v493_v12 = vadd.f32 %v492_v4, %v445_v3  ;;  %v613_v4 = vperm.slane %v611_v1, 0 }
 0x152   : > { %v522_v14 = vadd.f32 %v521_v5, %v445_v3 }
 0x153   : > { %v541_v21 = vmul.f32 0.01, %v493_v12  ;;  %vm533_vm12 = vcmp.ge.f32.partialorder %v493_v12, 0.0 }
 0x154   : > { %v542_v23 = vmul.f32 0.01, %v522_v14  ;;  %vm534_vm13 = vcmp.ge.f32.partialorder %v522_v14, 0.0 }
 0x155   : > { %v549_v29 = vsel %vm533_vm12, %v493_v12, %v541_v21 }
 0x156   : > { %v550_v30 = vsel %vm534_vm13, %v522_v14, %v542_v23  ;;  %v582_v40 = vmul.f32 %v565_v22, %v549_v29 }
 0x157   : > { %v583_v41 = vmul.f32 %v565_v22, %v550_v30 }
 0x158   : > { %v495_v6 = vpop.f32.mrf.mxu2 }
 0x159   : > { %v524_v7 = vpop.f32.mrf.mxu3  ;;  %v496_v10 = vadd.f32 %v495_v6, %v450_v8 }
 0x15a   : > { %v525_v11 = vadd.f32 %v524_v7, %v450_v8  ;;  %v622_v7 = vlaneseq }
 0x15b   : > { %v543_v17 = vmul.f32 0.01, %v496_v10  ;;  %vm535_vm10 = vcmp.ge.f32.partialorder %v496_v10, 0.0 }
 0x15c   : > { %v544_v18 = vmul.f32 0.01, %v525_v11  ;;  %vm536_vm11 = vcmp.ge.f32.partialorder %v525_v11, 0.0  ;;  %vm624_vm3 = vcmp.lt.s32.totalorder %v622_v7, 256 }
 0x15d   : > { %v551_v26 = vsel %vm535_vm10, %v496_v10, %v543_v17 }
 0x15e   : > { %v552_v27 = vsel %vm536_vm11, %v525_v11, %v544_v18  ;;  %v584_v33 = vmul.f32 %v570_v28, %v551_v26 }
 0x15f   : > { %v585_v34 = vmul.f32 %v570_v28, %v552_v27 }
 0x160   : > { %v498_v15 = vpop.f32.mrf.mxu2  ;;  %v590_v46 = vadd.f32 %v584_v33, %v582_v40 }
 0x161   : > { %v527_v16 = vpop.f32.mrf.mxu3  ;;  %v499_v19 = vadd.f32 %v498_v15, %v455_v9  ;;  %v599_v47 = vadd.f32 %v585_v34, %v583_v41 }
 0x162   : > { %v528_v20 = vadd.f32 %v527_v16, %v455_v9 }
 0x163   : > { %v545_v24 = vmul.f32 0.01, %v499_v19  ;;  %vm537_vm14 = vcmp.ge.f32.partialorder %v499_v19, 0.0 }
 0x164   : > { %v546_v25 = vmul.f32 0.01, %v528_v20  ;;  %vm538_vm15 = vcmp.ge.f32.partialorder %v528_v20, 0.0 }
 0x165   : > { %v553_v31 = vsel %vm537_vm14, %v499_v19, %v545_v24 }
 0x166   : > { %v554_v32 = vsel %vm538_vm15, %v528_v20, %v546_v25  ;;  %v586_v42 = vmul.f32 %v575_v37, %v553_v31 }
 0x167   : > { %v587_v43 = vmul.f32 %v575_v37, %v554_v32 }
 0x168   : > { %v501_v35 = vpop.f32.mrf.mxu2  ;;  %v591_v51 = vadd.f32 %v590_v46, %v586_v42 }
 0x169   : > { %v530_v36 = vpop.f32.mrf.mxu3  ;;  %v502_v38 = vadd.f32 %v501_v35, %v460_v13  ;;  %v600_v52 = vadd.f32 %v599_v47, %v587_v43 }
 0x16a   : > { %v531_v39 = vadd.f32 %v530_v36, %v460_v13 }
 0x16b   : > { %vm539_vm0 = vcmp.ge.f32.partialorder %v502_v38, 0.0  ;;  %v547_v44 = vmul.f32 0.01, %v502_v38 }
 0x16c   : > { %vm540_vm1 = vcmp.ge.f32.partialorder %v531_v39, 0.0  ;;  %v548_v45 = vmul.f32 0.01, %v531_v39 }
 0x16d   : > { %v555_v49 = vsel %vm539_vm0, %v502_v38, %v547_v44 }
 0x16e   : > { %v556_v50 = vsel %vm540_vm1, %v531_v39, %v548_v45  ;;  %v588_v53 = vmul.f32 %v580_v48, %v555_v49 }
 0x16f   : > { %v589_v54 = vmul.f32 %v580_v48, %v556_v50 }
 0x170   : > { %v592_v55 = vadd.f32 %v591_v51, %v588_v53 }
 0x171   : > { %v601_v56 = vadd.f32 %v600_v52, %v589_v54 }
 0x172   : > { %v593_v57 = vrot.slane %v592_v55, 4 }
 0x173   : > { %v602_v58 = vrot.slane %v601_v56, 4 }
 0x174   : > { %v594_v59 = vadd.f32 %v593_v57, %v592_v55 }
 0x175   : > { %v603_v60 = vadd.f32 %v602_v58, %v601_v56 }
 0x176   : > { %v595_v61 = vrot.slane %v594_v59, 2 }
 0x177   : > { %v604_v62 = vrot.slane %v603_v60, 2 }
 0x178   : > { %v596_v63 = vadd.f32 %v595_v61, %v594_v59 }
 0x179   : > { %v605_v0 = vadd.f32 %v604_v62, %v603_v60 }
 0x17a   : > { %v597_v2 = vrot.slane %v596_v63, 1 }
 0x17b   : > { %v606_v3 = vrot.slane %v605_v0, 1 }
 0x17c   : > { %v598_v5 = vadd.f32 %v597_v2, %v596_v63 }
 0x17d   : > { %v607_v6 = vadd.f32 %v606_v3, %v605_v0 }
 0x17e   : > { %v614_v9 = vadd.f32 %v613_v4, %v598_v5 }
 0x17f   : > { %v615_v8 = vadd.f32 %v613_v4, %v607_v6 }
 0x181   : > { %v618_v10 = vrot.slane %v615_v8, 7 }
 0x183   : > { %v620_v11 = vsel %vm619_vm2, %v614_v9, %v618_v10 }
 0x184   : > { %626 = vst.msk [vmem:[%s304_s9] sm:$0x3] %vm624_vm3, %v620_v11 }
 0x185   : > { %808 = shalt.err (!%p805_p5)
}
 0x186   : > { %738 = dma.vmem_to_hbm [thread:$0]  (%p927_p6), %s641_s10, 32, %s643_s14, %s628_s6  }
 0x187 PF: > { %s654_s23 = sand.u32 1, %s831_s26   ;;  %p741_p7 = pnand %p710_p9, %p931_p8 }
 0x188   : > { %s655_s22 = scalar_lea.sflag [#allocation5], %s654_s23 }
 0x189   : > { %p742_p10 = pneg %p741_p7 }
 0x18b   : > { %826 = dma.done.wait (%p742_p10), %s655_s22, 32  }
 0x18c   : > { %828 = vsyncadd (%p742_p10), %s655_s22, 4294967264  ;;  %p19_p11 = scmp.ge.s32.totalorder %s912_s8, 4   ;;  %s1070_s26 = smov %s835_s27 }
 0x18d   : > { %s1071_s27 = smov %s839_s28  ;;  %s1072_s28 = smov %s925_s11 }
 0x18e   : > { %s1073_s29 = smov %s912_s8  ;;  %21 = sbr.rel (!%p19_p11) target bundleno = 6 (0x6), region = 111 }
 0x193   :  { %661 = vsyncpa [#allocation5], 1 }
 0x194   :  { %663 = vsyncpa [#allocation5 + $0x1], 1 }

</bundles_post_ra>
